<compile_context>
chip_gen: v5e
topology: v5e:2x2
jax: 0.10.0
libtpu: 0.0.40
codegen_flags: <defaults>
</compile_context>

<pallas_src>
import jax
import jax.numpy as jnp
from jax.experimental import pallas as pl
from jax.experimental.pallas import tpu as pltpu

BN_EPS = 1e-5


# --------------------------------------------------------------------------------------
# Kernels
# --------------------------------------------------------------------------------------

def _pre_kernel(g_ref, x_ref, wg_ref, wx_ref,
                g1_ref, x1_ref, stats_ref,
                sg_acc, sgq_acc, sx_acc, sxq_acc):
    """Pass 1: g1 = Wg@g, x1 = Wx@x (streamed out once) + per-channel BN statistics.

    g_ref: (F_g, tm), x_ref: (F_l, tm), wg_ref: (F_int, F_g), wx_ref: (F_int, F_l)
    g1_ref / x1_ref: (F_int, tm) intermediates consumed by pass 2.
    stats_ref: (F_int, 4) = [sum_g1, sumsq_g1, sum_x1, sumsq_x1], written once per chunk.
    """
    g1 = jnp.dot(wg_ref[...], g_ref[...], preferred_element_type=jnp.float32)
    x1 = jnp.dot(wx_ref[...], x_ref[...], preferred_element_type=jnp.float32)
    g1_ref[...] = g1.astype(g1_ref.dtype)
    x1_ref[...] = x1.astype(x1_ref.dtype)

    @pl.when(pl.program_id(2) == 0)
    def _init():
        sg_acc[...] = jnp.zeros_like(sg_acc)
        sgq_acc[...] = jnp.zeros_like(sgq_acc)
        sx_acc[...] = jnp.zeros_like(sx_acc)
        sxq_acc[...] = jnp.zeros_like(sxq_acc)

    sg_acc[...] += jnp.sum(g1, axis=1, keepdims=True)
    sgq_acc[...] += jnp.sum(g1 * g1, axis=1, keepdims=True)
    sx_acc[...] += jnp.sum(x1, axis=1, keepdims=True)
    sxq_acc[...] += jnp.sum(x1 * x1, axis=1, keepdims=True)

    @pl.when(pl.program_id(2) == pl.num_programs(2) - 1)
    def _flush():
        stats_ref[...] = jnp.concatenate(
            [sg_acc[...], sgq_acc[...], sx_acc[...], sxq_acc[...]], axis=1)


def _psi_kernel(g1_ref, x1_ref, coef_ref, psi_ref, pstats_ref, ps_acc, psq_acc):
    """Pass 2: a = relu(scale_g*g1 + scale_x*x1 + shift);  psi_pre = sum_c wp_c * a_c.

    coef_ref: (F_int, 4) f32, columns = [scale_g, scale_x, shift_g+shift_x, wp].
    psi_ref: (1, tm) pre-activation; pstats_ref: (1, 2) = [sum, sumsq], once per chunk.
    """
    c = coef_ref[...]
    sg, sx, sh, wp = c[:, 0:1], c[:, 1:2], c[:, 2:3], c[:, 3:4]
    a = jnp.maximum(sg * g1_ref[...].astype(jnp.float32)
                    + sx * x1_ref[...].astype(jnp.float32) + sh, 0.0)     # (F_int, tm)
    p = jnp.sum(wp * a, axis=0, keepdims=True)                            # (1, tm)
    psi_ref[...] = p

    @pl.when(pl.program_id(2) == 0)
    def _init():
        ps_acc[...] = jnp.zeros_like(ps_acc)
        psq_acc[...] = jnp.zeros_like(psq_acc)

    ps_acc[...] += jnp.sum(p, axis=1, keepdims=True)
    psq_acc[...] += jnp.sum(p * p, axis=1, keepdims=True)

    @pl.when(pl.program_id(2) == pl.num_programs(2) - 1)
    def _flush():
        pstats_ref[...] = jnp.concatenate([ps_acc[...], psq_acc[...]], axis=1)


def _gate_kernel(x_ref, ppre_ref, psc_ref, out_ref):
    """Pass 3: psi = sigmoid(scale*psi_pre + shift); out = x * psi (broadcast over F_l)."""
    scale = psc_ref[0]          # SMEM scalars: no (8,128) vreg padding for tiny blocks
    shift = psc_ref[1]
    psi = jax.nn.sigmoid(ppre_ref[...] * scale + shift)                   # (1, tm) f32
    out_ref[...] = (x_ref[...] * psi).astype(out_ref.dtype)


# --------------------------------------------------------------------------------------
# Tiling helpers
# --------------------------------------------------------------------------------------

def _vmem_capacity_bytes():
    """Physical VMEM per TensorCore, conservative fallback = 64 MiB (v7x)."""
    try:
        info = pltpu.get_tpu_info()
        cap = int(getattr(info, "vmem_capacity_bytes", 0) or 0)
        if cap > 0:
            return cap
    except Exception:
        pass
    return 64 * 1024 * 1024


def _pick_lane_tile(hw, per_lane_bytes, fixed_bytes, budget_bytes, lane_cap):
    """Largest lane tile (multiple of 128, <= lane_cap) whose double-buffered working set
    fits the VMEM budget; never larger than the 128-padded spatial extent."""
    hw128 = -(-hw // 128) * 128
    avail = max(budget_bytes - fixed_bytes, 128 * per_lane_bytes)
    tm = (avail // per_lane_bytes) // 128 * 128
    return int(max(128, min(tm, lane_cap, hw128)))


# --------------------------------------------------------------------------------------
# Wrapper
# --------------------------------------------------------------------------------------

def init_params(key, F_g, F_l, F_int, dtype=jnp.float32):
    # 1x1-conv weights stored as (C_out, C_in).  Conv biases are omitted: a constant
    # added before training-mode BatchNorm is cancelled exactly by the mean subtraction.
    k1, k2, k3, k4, k5, k6, k7, k8, k9 = jax.random.split(key, 9)
    return dict(
        wg=jax.random.normal(k1, (F_int, F_g), dtype) * (F_g ** -0.5),
        wx=jax.random.normal(k2, (F_int, F_l), dtype) * (F_l ** -0.5),
        wp=jax.random.normal(k3, (1, F_int), dtype) * (F_int ** -0.5),
        gg=1.0 + 0.1 * jax.random.normal(k4, (F_int,), dtype),
        gb=0.1 * jax.random.normal(k5, (F_int,), dtype),
        xg=1.0 + 0.1 * jax.random.normal(k6, (F_int,), dtype),
        xb=0.1 * jax.random.normal(k7, (F_int,), dtype),
        pg=1.0 + 0.1 * jax.random.normal(k8, (1,), dtype),
        pb=0.1 * jax.random.normal(k9, (1,), dtype),
    )


def attention_block(g, x, params, *, inter_dtype=None, lane_tile_cap=1024):
    """g: (N, F_g, H, W), x: (N, F_l, H, W)  ->  (N, F_l, H, W)   (NCHW in/out).

    inter_dtype:   dtype of the streamed g1/x1 pre-activations written by pass 1 and read
                   back by pass 2.  Default: bf16 for bf16 inputs, else f32 (exact).
                   Passing jnp.bfloat16 with f32 inputs trims ~15-20% of total HBM bytes
                   at a small mixed-precision cost.
    lane_tile_cap: upper bound on the H*W lane tile; the VMEM-budget-aware picker may
                   shrink it further (512-1024 lanes already reach >=85% HBM roofline).
    """
    N, F_g, H, W = g.shape
    Nx, F_l, Hx, Wx = x.shape
    assert (N, H, W) == (Nx, Hx, Wx), "g and x must share batch / spatial dims"
    F_int = params["wg"].shape[0]
    HW = H * W
    M_total = N * HW
    f32 = jnp.float32
    bf16 = jnp.dtype(jnp.bfloat16)

    g = g.astype(x.dtype)                                   # one activation dtype
    if inter_dtype is None:
        inter_dtype = jnp.bfloat16 if x.dtype == bf16 else f32
    act_b = jnp.dtype(x.dtype).itemsize
    int_b = jnp.dtype(inter_dtype).itemsize

    # ---- VMEM-budget-aware lane tile (per-generation: v7x has only 64 MiB / TC) ------
    cap = _vmem_capacity_bytes()
    budget = cap // 3                                        # keep live tiles well inside VMEM
    lane_p1 = 2 * (F_g + F_l) * act_b + 2 * 2 * F_int * int_b + 2 * F_int * 4
    lane_p2 = 2 * 2 * F_int * int_b + 2 * F_int * 4 + 8
    lane_p3 = 2 * F_l * act_b + 2 * F_l * act_b + 8
    per_lane = max(lane_p1, lane_p2, lane_p3)
    fixed = 8 * F_int * (F_g + F_l) + 64 * F_int + (1 << 16)  # weights / coef / stat columns
    lane_cap = max(128, (int(lane_tile_cap) // 128) * 128)
    tm = _pick_lane_tile(HW, per_lane, fixed, budget, lane_cap)
    vmem_limit = int(min(max(cap * 3 // 4, 32 * 1024 * 1024), 96 * 1024 * 1024))

    # ---- pad H*W to a multiple of tm; megacore chunking (P=2) when N == 1 ------------
    n_m = -(-HW // tm)
    P = 1
    if N == 1 and n_m >= 2:
        P = 2
        if n_m % 2:
            n_m += 1                                         # one all-zero tile; exact (fixed up)
    HW_pad = n_m * tm
    n_j = n_m // P

    g3 = g.reshape(N, F_g, HW)
    x3 = x.reshape(N, F_l, HW)
    if HW_pad != HW:
        g3 = jnp.pad(g3, ((0, 0), (0, 0), (0, HW_pad - HW)))
        x3 = jnp.pad(x3, ((0, 0), (0, 0), (0, HW_pad - HW)))

    mm_dtype = x.dtype if x.dtype == bf16 else f32           # bf16-native MXU on v6e/v7x
    wg = params["wg"].astype(mm_dtype)                       # (F_int, F_g)
    wx = params["wx"].astype(mm_dtype)                       # (F_int, F_l)

    tile_map = lambda n, p, j: (n, 0, p * n_j + j)
    stat_map = lambda n, p, j: (n * P + p, 0, 0)
    const2 = lambda n, p, j: (0, 0)

    g_spec = pl.BlockSpec((None, F_g, tm), tile_map)
    x_spec = pl.BlockSpec((None, F_l, tm), tile_map)
    g1_spec = pl.BlockSpec((None, F_int, tm), tile_map)

    cp12 = pltpu.CompilerParams(
        dimension_semantics=("parallel", "parallel", "arbitrary"),
        vmem_limit_bytes=vmem_limit)

    # ---------------- pass 1: 1x1 convs (once) + per-channel BN statistics ------------
    g1, x1, stats1 = pl.pallas_call(
        _pre_kernel,
        out_shape=(jax.ShapeDtypeStruct((N, F_int, HW_pad), inter_dtype),
                   jax.ShapeDtypeStruct((N, F_int, HW_pad), inter_dtype),
                   jax.ShapeDtypeStruct((N * P, F_int, 4), f32)),
        grid=(N, P, n_j),
        in_specs=[g_spec, x_spec,
                  pl.BlockSpec((F_int, F_g), const2),
                  pl.BlockSpec((F_int, F_l), const2)],
        out_specs=(g1_spec, g1_spec,
                   pl.BlockSpec((None, F_int, 4), stat_map)),
        scratch_shapes=[pltpu.VMEM((F_int, 1), f32)] * 4,
        compiler_params=cp12,
    )(g3, x3, wg, wx)

    # Tiny host-side math on (F_int,)-sized arrays: fold BN into an affine per channel.
    s = jnp.sum(stats1, axis=0)                              # (F_int, 4)
    mean_g = s[:, 0] / M_total
    var_g = jnp.maximum(s[:, 1] / M_total - mean_g * mean_g, 0.0)   # clamp: E[x^2]-E[x]^2
    mean_x = s[:, 2] / M_total
    var_x = jnp.maximum(s[:, 3] / M_total - mean_x * mean_x, 0.0)
    scale_g = params["gg"].astype(f32) * jax.lax.rsqrt(var_g + BN_EPS)
    shift_g = params["gb"].astype(f32) - scale_g * mean_g
    scale_x = params["xg"].astype(f32) * jax.lax.rsqrt(var_x + BN_EPS)
    shift_x = params["xb"].astype(f32) - scale_x * mean_x
    wp_vec = params["wp"].astype(f32).reshape(-1)            # (F_int,)
    coef = jnp.stack([scale_g, scale_x, shift_g + shift_x, wp_vec], axis=1)   # (F_int, 4)

    # ---------------- pass 2: psi pre-activation + its batch statistics ---------------
    psi_pre, pstats = pl.pallas_call(
        _psi_kernel,
        out_shape=(jax.ShapeDtypeStruct((N, 1, HW_pad), f32),
                   jax.ShapeDtypeStruct((N * P, 1, 2), f32)),
        grid=(N, P, n_j),
        in_specs=[g1_spec, g1_spec,
                  pl.BlockSpec((F_int, 4), const2)],
        out_specs=(pl.BlockSpec((None, 1, tm), tile_map),
                   pl.BlockSpec((None, 1, 2), stat_map)),
        scratch_shapes=[pltpu.VMEM((1, 1), f32)] * 2,
        compiler_params=cp12,
    )(g1, x1, coef)

    s2 = jnp.sum(pstats, axis=(0, 1))                        # (2,)
    sum_p, sumsq_p = s2[0], s2[1]
    n_pad = N * (HW_pad - HW)
    if n_pad:
        # Padded columns have g1 = x1 = 0 exactly, so their psi pre-activation is the
        # constant p_pad = sum(wp * relu(shift)); subtract it analytically.
        a_pad = jnp.maximum(shift_g + shift_x, 0.0)
        p_pad = jnp.sum(wp_vec * a_pad)
        sum_p = sum_p - n_pad * p_pad
        sumsq_p = sumsq_p - n_pad * p_pad * p_pad
    mean_p = sum_p / M_total
    var_p = jnp.maximum(sumsq_p / M_total - mean_p * mean_p, 0.0)
    scale_p = params["pg"].astype(f32).reshape(()) * jax.lax.rsqrt(var_p + BN_EPS)
    shift_p = params["pb"].astype(f32).reshape(()) - scale_p * mean_p
    psc = jnp.stack([scale_p, shift_p])                      # (2,) f32, passed via SMEM

    # ---------------- pass 3: sigmoid gate + multiply (fully parallel) ----------------
    out3 = pl.pallas_call(
        _gate_kernel,
        out_shape=jax.ShapeDtypeStruct((N, F_l, HW_pad), x.dtype),
        grid=(N, n_m),
        in_specs=[pl.BlockSpec((None, F_l, tm), lambda n, m: (n, 0, m)),
                  pl.BlockSpec((None, 1, tm), lambda n, m: (n, 0, m)),
                  pl.BlockSpec(memory_space=pltpu.MemorySpace.SMEM)],
        out_specs=pl.BlockSpec((None, F_l, tm), lambda n, m: (n, 0, m)),
        compiler_params=pltpu.CompilerParams(
            dimension_semantics=("parallel", "parallel"),
            vmem_limit_bytes=vmem_limit),
    )(x3, psi_pre, psc)

    return out3[:, :, :HW].reshape(N, F_l, H, W)


# --------------------------------------------------------------------------------------
# Pure-JAX reference (mirrors the PyTorch training-mode forward)
# --------------------------------------------------------------------------------------

def attention_block_reference(g, x, params):
    def bn(v, gamma, beta):
        mu = jnp.mean(v, axis=(0, 2, 3), keepdims=True)
        var = jnp.mean((v - mu) ** 2, axis=(0, 2, 3), keepdims=True)
        return ((v - mu) * jax.lax.rsqrt(var + BN_EPS) * gamma.reshape(1, -1, 1, 1)
                + beta.reshape(1, -1, 1, 1))

    def conv1x1(v, w):  # w: (C_out, C_in)
        return jnp.einsum("oc,nchw->nohw", w, v)

    g1 = bn(conv1x1(g, params["wg"]), params["gg"], params["gb"])
    x1 = bn(conv1x1(x, params["wx"]), params["xg"], params["xb"])
    a = jnp.maximum(g1 + x1, 0.0)
    p = jax.nn.sigmoid(bn(conv1x1(a, params["wp"]), params["pg"], params["pb"]))
    return x * p


# --------------------------------------------------------------------------------------
# Tests
# --------------------------------------------------------------------------------------

if __name__ == "__main__":
    k1, k2, k3, k4, k5, k6 = jax.random.split(jax.random.PRNGKey(0), 6)

    # --- test 1: f32, divisible spatial size, N >= 2 ----------------------------------
    N, F_g, F_l, F_int, H, W = 2, 4, 4, 8, 16, 16
    g = jax.random.normal(k1, (N, F_g, H, W), jnp.float32)
    x = jax.random.normal(k2, (N, F_l, H, W), jnp.float32)
    params = init_params(k3, F_g, F_l, F_int)

    out = jax.jit(attention_block)(g, x, params)
    jax.block_until_ready(out)
    assert out.shape == (N, F_l, H, W)
    ref = attention_block_reference(g, x, params)
    assert jnp.allclose(out, ref, atol=2e-3, rtol=2e-3), \
        float(jnp.max(jnp.abs(out - ref)))

    # --- test 2: N == 1 (megacore chunk split) + non-divisible H*W (padded tail) ------
    N2, Fg2, Fl2, Fi2, H2, W2 = 1, 4, 4, 8, 18, 18          # H*W = 324 -> zero-padded
    g2 = jax.random.normal(k4, (N2, Fg2, H2, W2), jnp.float32)
    x2 = jax.random.normal(k5, (N2, Fl2, H2, W2), jnp.float32)
    params2 = init_params(k6, Fg2, Fl2, Fi2)
    out2 = jax.jit(lambda a, b, p: attention_block(a, b, p, lane_tile_cap=128))(
        g2, x2, params2)
    jax.block_until_ready(out2)
    ref2 = attention_block_reference(g2, x2, params2)
    assert jnp.allclose(out2, ref2, atol=2e-3, rtol=2e-3), \
        float(jnp.max(jnp.abs(out2 - ref2)))

    # --- test 3: bf16 I/O + bf16 intermediates (v6e/v7x bandwidth mode) ---------------
    gb, xb = g.astype(jnp.bfloat16), x.astype(jnp.bfloat16)
    out3 = jax.jit(attention_block)(gb, xb, params)
    jax.block_until_ready(out3)
    ref3 = attention_block_reference(gb.astype(jnp.float32), xb.astype(jnp.float32),
                                     params)
    assert jnp.allclose(out3.astype(jnp.float32), ref3, atol=5e-2, rtol=5e-2), \
        float(jnp.max(jnp.abs(out3.astype(jnp.float32) - ref3)))

    print("KERNEL_OK")
</pallas_src>

<mosaic_0001>
module attributes {stable_mosaic.version = 11 : i64} {
  func.func @_pre_kernel(%arg0: i32, %arg1: i32, %arg2: i32, %arg3: memref<1x4x256xf32, #tpu.memory_space<vmem>>, %arg4: memref<1x4x256xf32, #tpu.memory_space<vmem>>, %arg5: memref<8x4xf32, #tpu.memory_space<vmem>>, %arg6: memref<8x4xf32, #tpu.memory_space<vmem>>, %arg7: memref<1x8x256xf32, #tpu.memory_space<vmem>>, %arg8: memref<1x8x256xf32, #tpu.memory_space<vmem>>, %arg9: memref<1x8x4xf32, #tpu.memory_space<vmem>>, %arg10: memref<8x1xf32, #tpu.memory_space<vmem>>, %arg11: memref<8x1xf32, #tpu.memory_space<vmem>>, %arg12: memref<8x1xf32, #tpu.memory_space<vmem>>, %arg13: memref<8x1xf32, #tpu.memory_space<vmem>>) attributes {dimension_semantics = [#tpu.dimension_semantics<parallel>, #tpu.dimension_semantics<parallel>, #tpu.dimension_semantics<arbitrary>], iteration_bounds = array<i64: 2, 1, 1>, scalar_prefetch = 0 : i64, scratch_operands = 4 : i64, tpu.core_type = #tpu.core_type<tc>, window_params = [{transform_indices = @transform_0, window_bounds = array<i64: 1, 4, 256>}, {transform_indices = @transform_1, window_bounds = array<i64: 1, 4, 256>}, {pipeline_mode = #tpu.pipeline_mode<synchronous>, transform_indices = @transform_2, window_bounds = array<i64: 8, 4>}, {pipeline_mode = #tpu.pipeline_mode<synchronous>, transform_indices = @transform_3, window_bounds = array<i64: 8, 4>}, {transform_indices = @transform_4, window_bounds = array<i64: 1, 8, 256>}, {transform_indices = @transform_5, window_bounds = array<i64: 1, 8, 256>}, {transform_indices = @transform_6, window_bounds = array<i64: 1, 8, 4>}]} {
    %c0 = arith.constant 0 : index
    %c0_0 = arith.constant 0 : index
    %0 = vector.load %arg5[%c0, %c0_0] : memref<8x4xf32, #tpu.memory_space<vmem>>, vector<8x4xf32>
    %c0_1 = arith.constant 0 : index
    %c0_2 = arith.constant 0 : index
    %c0_3 = arith.constant 0 : index
    %1 = vector.load %arg3[%c0_1, %c0_2, %c0_3] : memref<1x4x256xf32, #tpu.memory_space<vmem>>, vector<1x4x256xf32>
    %2 = vector.shape_cast %1 : vector<1x4x256xf32> to vector<4x256xf32>
    %cst = arith.constant dense<0.000000e+00> : vector<8x256xf32>
    %3 = tpu.matmul %0, %2, %cst {dimension_numbers = #tpu.dot_dimension_numbers<[1], [0], [0], [1], [0, 0, 1, 1], [], []>} : vector<8x4xf32>, vector<4x256xf32>, vector<8x256xf32> -> vector<8x256xf32>
    %c0_4 = arith.constant 0 : index
    %c0_5 = arith.constant 0 : index
    %4 = vector.load %arg6[%c0_4, %c0_5] : memref<8x4xf32, #tpu.memory_space<vmem>>, vector<8x4xf32>
    %c0_6 = arith.constant 0 : index
    %c0_7 = arith.constant 0 : index
    %c0_8 = arith.constant 0 : index
    %5 = vector.load %arg4[%c0_6, %c0_7, %c0_8] : memref<1x4x256xf32, #tpu.memory_space<vmem>>, vector<1x4x256xf32>
    %6 = vector.shape_cast %5 : vector<1x4x256xf32> to vector<4x256xf32>
    %cst_9 = arith.constant dense<0.000000e+00> : vector<8x256xf32>
    %7 = tpu.matmul %4, %6, %cst_9 {dimension_numbers = #tpu.dot_dimension_numbers<[1], [0], [0], [1], [0, 0, 1, 1], [], []>} : vector<8x4xf32>, vector<4x256xf32>, vector<8x256xf32> -> vector<8x256xf32>
    %c0_10 = arith.constant 0 : index
    %c0_11 = arith.constant 0 : index
    %c0_12 = arith.constant 0 : index
    %8 = vector.load %arg7[%c0_10, %c0_11, %c0_12] : memref<1x8x256xf32, #tpu.memory_space<vmem>>, vector<1x8x256xf32>
    %9 = vector.shape_cast %8 : vector<1x8x256xf32> to vector<8x256xf32>
    %10 = vector.shape_cast %3 : vector<8x256xf32> to vector<1x8x256xf32>
    tpu.vector_store %arg7[%c0_10, %c0_11, %c0_12], %10 {strides = array<i32>} : memref<1x8x256xf32, #tpu.memory_space<vmem>>, vector<1x8x256xf32>,
    %c0_13 = arith.constant 0 : index
    %c0_14 = arith.constant 0 : index
    %c0_15 = arith.constant 0 : index
    %11 = vector.load %arg8[%c0_13, %c0_14, %c0_15] : memref<1x8x256xf32, #tpu.memory_space<vmem>>, vector<1x8x256xf32>
    %12 = vector.shape_cast %11 : vector<1x8x256xf32> to vector<8x256xf32>
    %13 = vector.shape_cast %7 : vector<8x256xf32> to vector<1x8x256xf32>
    tpu.vector_store %arg8[%c0_13, %c0_14, %c0_15], %13 {strides = array<i32>} : memref<1x8x256xf32, #tpu.memory_space<vmem>>, vector<1x8x256xf32>,
    %c0_i32 = arith.constant 0 : i32
    %14 = arith.cmpi eq, %arg2, %c0_i32 : i32
    %15 = arith.extui %14 : i1 to i32
    %c0_i32_16 = arith.constant 0 : i32
    %16 = arith.cmpi ne, %15, %c0_i32_16 : i32
    scf.if %16 {
      %cst_39 = arith.constant 0.000000e+00 : f32
      %42 = vector.broadcast %cst_39 : f32 to vector<8x1xf32>
      %c0_40 = arith.constant 0 : index
      %c0_41 = arith.constant 0 : index
      %43 = vector.load %arg10[%c0_40, %c0_41] : memref<8x1xf32, #tpu.memory_space<vmem>>, vector<8x1xf32>
      tpu.vector_store %arg10[%c0_40, %c0_41], %42 {strides = array<i32>} : memref<8x1xf32, #tpu.memory_space<vmem>>, vector<8x1xf32>,
      %cst_42 = arith.constant 0.000000e+00 : f32
      %44 = vector.broadcast %cst_42 : f32 to vector<8x1xf32>
      %c0_43 = arith.constant 0 : index
      %c0_44 = arith.constant 0 : index
      %45 = vector.load %arg11[%c0_43, %c0_44] : memref<8x1xf32, #tpu.memory_space<vmem>>, vector<8x1xf32>
      tpu.vector_store %arg11[%c0_43, %c0_44], %44 {strides = array<i32>} : memref<8x1xf32, #tpu.memory_space<vmem>>, vector<8x1xf32>,
      %cst_45 = arith.constant 0.000000e+00 : f32
      %46 = vector.broadcast %cst_45 : f32 to vector<8x1xf32>
      %c0_46 = arith.constant 0 : index
      %c0_47 = arith.constant 0 : index
      %47 = vector.load %arg12[%c0_46, %c0_47] : memref<8x1xf32, #tpu.memory_space<vmem>>, vector<8x1xf32>
      tpu.vector_store %arg12[%c0_46, %c0_47], %46 {strides = array<i32>} : memref<8x1xf32, #tpu.memory_space<vmem>>, vector<8x1xf32>,
      %cst_48 = arith.constant 0.000000e+00 : f32
      %48 = vector.broadcast %cst_48 : f32 to vector<8x1xf32>
      %c0_49 = arith.constant 0 : index
      %c0_50 = arith.constant 0 : index
      %49 = vector.load %arg13[%c0_49, %c0_50] : memref<8x1xf32, #tpu.memory_space<vmem>>, vector<8x1xf32>
      tpu.vector_store %arg13[%c0_49, %c0_50], %48 {strides = array<i32>} : memref<8x1xf32, #tpu.memory_space<vmem>>, vector<8x1xf32>,
    } else {
    }
    %c0_17 = arith.constant 0 : index
    %c0_18 = arith.constant 0 : index
    %17 = vector.load %arg10[%c0_17, %c0_18] : memref<8x1xf32, #tpu.memory_space<vmem>>, vector<8x1xf32>
    %cst_19 = arith.constant dense<0.000000e+00> : vector<8xf32>
    %18 = vector.multi_reduction <add>, %3, %cst_19 [1] : vector<8x256xf32> to vector<8xf32>
    %19 = vector.shape_cast %18 : vector<8xf32> to vector<8x1xf32>
    %20 = arith.addf %17, %19 : vector<8x1xf32>
    %c0_20 = arith.constant 0 : index
    %c0_21 = arith.constant 0 : index
    %21 = vector.load %arg10[%c0_20, %c0_21] : memref<8x1xf32, #tpu.memory_space<vmem>>, vector<8x1xf32>
    tpu.vector_store %arg10[%c0_20, %c0_21], %20 {strides = array<i32>} : memref<8x1xf32, #tpu.memory_space<vmem>>, vector<8x1xf32>,
    %c0_22 = arith.constant 0 : index
    %c0_23 = arith.constant 0 : index
    %22 = vector.load %arg11[%c0_22, %c0_23] : memref<8x1xf32, #tpu.memory_space<vmem>>, vector<8x1xf32>
    %23 = arith.mulf %3, %3 : vector<8x256xf32>
    %cst_24 = arith.constant dense<0.000000e+00> : vector<8xf32>
    %24 = vector.multi_reduction <add>, %23, %cst_24 [1] : vector<8x256xf32> to vector<8xf32>
    %25 = vector.shape_cast %24 : vector<8xf32> to vector<8x1xf32>
    %26 = arith.addf %22, %25 : vector<8x1xf32>
    %c0_25 = arith.constant 0 : index
    %c0_26 = arith.constant 0 : index
    %27 = vector.load %arg11[%c0_25, %c0_26] : memref<8x1xf32, #tpu.memory_space<vmem>>, vector<8x1xf32>
    tpu.vector_store %arg11[%c0_25, %c0_26], %26 {strides = array<i32>} : memref<8x1xf32, #tpu.memory_space<vmem>>, vector<8x1xf32>,
    %c0_27 = arith.constant 0 : index
    %c0_28 = arith.constant 0 : index
    %28 = vector.load %arg12[%c0_27, %c0_28] : memref<8x1xf32, #tpu.memory_space<vmem>>, vector<8x1xf32>
    %cst_29 = arith.constant dense<0.000000e+00> : vector<8xf32>
    %29 = vector.multi_reduction <add>, %7, %cst_29 [1] : vector<8x256xf32> to vector<8xf32>
    %30 = vector.shape_cast %29 : vector<8xf32> to vector<8x1xf32>
    %31 = arith.addf %28, %30 : vector<8x1xf32>
    %c0_30 = arith.constant 0 : index
    %c0_31 = arith.constant 0 : index
    %32 = vector.load %arg12[%c0_30, %c0_31] : memref<8x1xf32, #tpu.memory_space<vmem>>, vector<8x1xf32>
    tpu.vector_store %arg12[%c0_30, %c0_31], %31 {strides = array<i32>} : memref<8x1xf32, #tpu.memory_space<vmem>>, vector<8x1xf32>,
    %c0_32 = arith.constant 0 : index
    %c0_33 = arith.constant 0 : index
    %33 = vector.load %arg13[%c0_32, %c0_33] : memref<8x1xf32, #tpu.memory_space<vmem>>, vector<8x1xf32>
    %34 = arith.mulf %7, %7 : vector<8x256xf32>
    %cst_34 = arith.constant dense<0.000000e+00> : vector<8xf32>
    %35 = vector.multi_reduction <add>, %34, %cst_34 [1] : vector<8x256xf32> to vector<8xf32>
    %36 = vector.shape_cast %35 : vector<8xf32> to vector<8x1xf32>
    %37 = arith.addf %33, %36 : vector<8x1xf32>
    %c0_35 = arith.constant 0 : index
    %c0_36 = arith.constant 0 : index
    %38 = vector.load %arg13[%c0_35, %c0_36] : memref<8x1xf32, #tpu.memory_space<vmem>>, vector<8x1xf32>
    tpu.vector_store %arg13[%c0_35, %c0_36], %37 {strides = array<i32>} : memref<8x1xf32, #tpu.memory_space<vmem>>, vector<8x1xf32>,
    %c0_i32_37 = arith.constant 0 : i32
    %39 = arith.cmpi eq, %arg2, %c0_i32_37 : i32
    %40 = arith.extui %39 : i1 to i32
    %c0_i32_38 = arith.constant 0 : i32
    %41 = arith.cmpi ne, %40, %c0_i32_38 : i32
    scf.if %41 {
      %c0_39 = arith.constant 0 : index
      %c0_40 = arith.constant 0 : index
      %42 = vector.load %arg10[%c0_39, %c0_40] : memref<8x1xf32, #tpu.memory_space<vmem>>, vector<8x1xf32>
      %c0_41 = arith.constant 0 : index
      %c0_42 = arith.constant 0 : index
      %43 = vector.load %arg11[%c0_41, %c0_42] : memref<8x1xf32, #tpu.memory_space<vmem>>, vector<8x1xf32>
      %c0_43 = arith.constant 0 : index
      %c0_44 = arith.constant 0 : index
      %44 = vector.load %arg12[%c0_43, %c0_44] : memref<8x1xf32, #tpu.memory_space<vmem>>, vector<8x1xf32>
      %c0_45 = arith.constant 0 : index
      %c0_46 = arith.constant 0 : index
      %45 = vector.load %arg13[%c0_45, %c0_46] : memref<8x1xf32, #tpu.memory_space<vmem>>, vector<8x1xf32>
      %46 = tpu.concatenate %42, %43, %44, %45 in 1 : vector<8x1xf32>, vector<8x1xf32>, vector<8x1xf32>, vector<8x1xf32> -> vector<8x4xf32>
      %c0_47 = arith.constant 0 : index
      %c0_48 = arith.constant 0 : index
      %c0_49 = arith.constant 0 : index
      %47 = vector.load %arg9[%c0_47, %c0_48, %c0_49] : memref<1x8x4xf32, #tpu.memory_space<vmem>>, vector<1x8x4xf32>
      %48 = vector.shape_cast %47 : vector<1x8x4xf32> to vector<8x4xf32>
      %49 = vector.shape_cast %46 : vector<8x4xf32> to vector<1x8x4xf32>
      tpu.vector_store %arg9[%c0_47, %c0_48, %c0_49], %49 {strides = array<i32>} : memref<1x8x4xf32, #tpu.memory_space<vmem>>, vector<1x8x4xf32>,
    } else {
    }
    return
  }
  func.func @transform_0(%arg0: i32, %arg1: i32, %arg2: i32) -> (i32, i32, i32) {
    %c1_i32 = arith.constant 1 : i32
    %0 = arith.muli %arg1, %c1_i32 : i32
    %1 = arith.addi %0, %arg2 : i32
    %c0_i32 = arith.constant 0 : i32
    %c0_i32_0 = arith.constant 0 : i32
    return %arg0, %c0_i32, %1 : i32, i32, i32
  }
  func.func @transform_1(%arg0: i32, %arg1: i32, %arg2: i32) -> (i32, i32, i32) {
    %c1_i32 = arith.constant 1 : i32
    %0 = arith.muli %arg1, %c1_i32 : i32
    %1 = arith.addi %0, %arg2 : i32
    %c0_i32 = arith.constant 0 : i32
    %c0_i32_0 = arith.constant 0 : i32
    return %arg0, %c0_i32, %1 : i32, i32, i32
  }
  func.func @transform_2(%arg0: i32, %arg1: i32, %arg2: i32) -> (i32, i32) {
    %c0_i32 = arith.constant 0 : i32
    %c0_i32_0 = arith.constant 0 : i32
    %c0_i32_1 = arith.constant 0 : i32
    return %c0_i32, %c0_i32_0 : i32, i32
  }
  func.func @transform_3(%arg0: i32, %arg1: i32, %arg2: i32) -> (i32, i32) {
    %c0_i32 = arith.constant 0 : i32
    %c0_i32_0 = arith.constant 0 : i32
    %c0_i32_1 = arith.constant 0 : i32
    return %c0_i32, %c0_i32_0 : i32, i32
  }
  func.func @transform_4(%arg0: i32, %arg1: i32, %arg2: i32) -> (i32, i32, i32) {
    %c1_i32 = arith.constant 1 : i32
    %0 = arith.muli %arg1, %c1_i32 : i32
    %1 = arith.addi %0, %arg2 : i32
    %c0_i32 = arith.constant 0 : i32
    %c0_i32_0 = arith.constant 0 : i32
    return %arg0, %c0_i32, %1 : i32, i32, i32
  }
  func.func @transform_5(%arg0: i32, %arg1: i32, %arg2: i32) -> (i32, i32, i32) {
    %c1_i32 = arith.constant 1 : i32
    %0 = arith.muli %arg1, %c1_i32 : i32
    %1 = arith.addi %0, %arg2 : i32
    %c0_i32 = arith.constant 0 : i32
    %c0_i32_0 = arith.constant 0 : i32
    return %arg0, %c0_i32, %1 : i32, i32, i32
  }
  func.func @transform_6(%arg0: i32, %arg1: i32, %arg2: i32) -> (i32, i32, i32) {
    %c1_i32 = arith.constant 1 : i32
    %0 = arith.muli %arg0, %c1_i32 : i32
    %1 = arith.addi %0, %arg1 : i32
    %c0_i32 = arith.constant 0 : i32
    %c0_i32_0 = arith.constant 0 : i32
    %c0_i32_1 = arith.constant 0 : i32
    return %1, %c0_i32, %c0_i32_0 : i32, i32, i32
  }
}

module attributes {stable_mosaic.version = 11 : i64} {
  func.func @_gate_kernel(%arg0: i32, %arg1: i32, %arg2: memref<1x4x256xf32, #tpu.memory_space<vmem>>, %arg3: memref<1x1x256xf32, #tpu.memory_space<vmem>>, %arg4: memref<2xf32, #tpu.memory_space<smem>>, %arg5: memref<1x4x256xf32, #tpu.memory_space<vmem>>) attributes {dimension_semantics = [#tpu.dimension_semantics<parallel>, #tpu.dimension_semantics<parallel>], iteration_bounds = array<i64: 2, 1>, scalar_prefetch = 0 : i64, scratch_operands = 0 : i64, tpu.core_type = #tpu.core_type<tc>, window_params = [{transform_indices = @transform_0, window_bounds = array<i64: 1, 4, 256>}, {transform_indices = @transform_1, window_bounds = array<i64: 1, 1, 256>}, {transform_indices = @transform_2, window_bounds = array<i64: 2>}, {transform_indices = @transform_3, window_bounds = array<i64: 1, 4, 256>}]} {
    %c0 = arith.constant 0 : index
    %0 = memref.load %arg4[%c0] : memref<2xf32, #tpu.memory_space<smem>>
    %c1 = arith.constant 1 : index
    %1 = memref.load %arg4[%c1] : memref<2xf32, #tpu.memory_space<smem>>
    %c0_0 = arith.constant 0 : index
    %c0_1 = arith.constant 0 : index
    %c0_2 = arith.constant 0 : index
    %2 = vector.load %arg3[%c0_0, %c0_1, %c0_2] : memref<1x1x256xf32, #tpu.memory_space<vmem>>, vector<1x1x256xf32>
    %3 = vector.shape_cast %2 : vector<1x1x256xf32> to vector<1x256xf32>
    %4 = vector.broadcast %0 : f32 to vector<1x256xf32>
    %5 = arith.mulf %3, %4 : vector<1x256xf32>
    %6 = vector.broadcast %1 : f32 to vector<1x256xf32>
    %7 = arith.addf %5, %6 : vector<1x256xf32>
    %8 = arith.negf %7 : vector<1x256xf32>
    %9 = math.exp %8 : vector<1x256xf32>
    %cst = arith.constant 1.000000e+00 : f32
    %10 = vector.broadcast %cst : f32 to vector<1x256xf32>
    %11 = arith.addf %10, %9 : vector<1x256xf32>
    %12 = arith.divf %10, %11 : vector<1x256xf32>
    %c0_3 = arith.constant 0 : index
    %c0_4 = arith.constant 0 : index
    %c0_5 = arith.constant 0 : index
    %13 = vector.load %arg2[%c0_3, %c0_4, %c0_5] : memref<1x4x256xf32, #tpu.memory_space<vmem>>, vector<1x4x256xf32>
    %14 = vector.shape_cast %13 : vector<1x4x256xf32> to vector<4x256xf32>
    %15 = vector.broadcast %12 : vector<1x256xf32> to vector<4x256xf32>
    %16 = arith.mulf %14, %15 : vector<4x256xf32>
    %c0_6 = arith.constant 0 : index
    %c0_7 = arith.constant 0 : index
    %c0_8 = arith.constant 0 : index
    %17 = vector.load %arg5[%c0_6, %c0_7, %c0_8] : memref<1x4x256xf32, #tpu.memory_space<vmem>>, vector<1x4x256xf32>
    %18 = vector.shape_cast %17 : vector<1x4x256xf32> to vector<4x256xf32>
    %19 = vector.shape_cast %16 : vector<4x256xf32> to vector<1x4x256xf32>
    tpu.vector_store %arg5[%c0_6, %c0_7, %c0_8], %19 {strides = array<i32>} : memref<1x4x256xf32, #tpu.memory_space<vmem>>, vector<1x4x256xf32>,
    return
  }
  func.func @transform_0(%arg0: i32, %arg1: i32) -> (i32, i32, i32) {
    %c0_i32 = arith.constant 0 : i32
    %c0_i32_0 = arith.constant 0 : i32
    return %arg0, %c0_i32, %arg1 : i32, i32, i32
  }
  func.func @transform_1(%arg0: i32, %arg1: i32) -> (i32, i32, i32) {
    %c0_i32 = arith.constant 0 : i32
    %c0_i32_0 = arith.constant 0 : i32
    return %arg0, %c0_i32, %arg1 : i32, i32, i32
  }
  func.func @transform_2(%arg0: i32, %arg1: i32) -> i32 {
    %c0_i32 = arith.constant 0 : i32
    %c0_i32_0 = arith.constant 0 : i32
    return %c0_i32 : i32
  }
  func.func @transform_3(%arg0: i32, %arg1: i32) -> (i32, i32, i32) {
    %c0_i32 = arith.constant 0 : i32
    %c0_i32_0 = arith.constant 0 : i32
    return %arg0, %c0_i32, %arg1 : i32, i32, i32
  }
}

module attributes {stable_mosaic.version = 11 : i64} {
  func.func @_psi_kernel(%arg0: i32, %arg1: i32, %arg2: i32, %arg3: memref<1x8x256xf32, #tpu.memory_space<vmem>>, %arg4: memref<1x8x256xf32, #tpu.memory_space<vmem>>, %arg5: memref<8x4xf32, #tpu.memory_space<vmem>>, %arg6: memref<1x1x256xf32, #tpu.memory_space<vmem>>, %arg7: memref<1x1x2xf32, #tpu.memory_space<vmem>>, %arg8: memref<1x1xf32, #tpu.memory_space<vmem>>, %arg9: memref<1x1xf32, #tpu.memory_space<vmem>>) attributes {dimension_semantics = [#tpu.dimension_semantics<parallel>, #tpu.dimension_semantics<parallel>, #tpu.dimension_semantics<arbitrary>], iteration_bounds = array<i64: 2, 1, 1>, scalar_prefetch = 0 : i64, scratch_operands = 2 : i64, tpu.core_type = #tpu.core_type<tc>, window_params = [{transform_indices = @transform_0, window_bounds = array<i64: 1, 8, 256>}, {transform_indices = @transform_1, window_bounds = array<i64: 1, 8, 256>}, {pipeline_mode = #tpu.pipeline_mode<synchronous>, transform_indices = @transform_2, window_bounds = array<i64: 8, 4>}, {transform_indices = @transform_3, window_bounds = array<i64: 1, 1, 256>}, {transform_indices = @transform_4, window_bounds = array<i64: 1, 1, 2>}]} {
    %c0 = arith.constant 0 : index
    %c0_0 = arith.constant 0 : index
    %0 = vector.load %arg5[%c0, %c0_0] : memref<8x4xf32, #tpu.memory_space<vmem>>, vector<8x4xf32>
    %1 = vector.extract_strided_slice %0 {offsets = [0, 0], sizes = [8, 1], strides = [1, 1]} : vector<8x4xf32> to vector<8x1xf32>
    %2 = vector.extract_strided_slice %0 {offsets = [0, 1], sizes = [8, 1], strides = [1, 1]} : vector<8x4xf32> to vector<8x1xf32>
    %3 = vector.extract_strided_slice %0 {offsets = [0, 2], sizes = [8, 1], strides = [1, 1]} : vector<8x4xf32> to vector<8x1xf32>
    %4 = vector.extract_strided_slice %0 {offsets = [0, 3], sizes = [8, 1], strides = [1, 1]} : vector<8x4xf32> to vector<8x1xf32>
    %c0_1 = arith.constant 0 : index
    %c0_2 = arith.constant 0 : index
    %c0_3 = arith.constant 0 : index
    %5 = vector.load %arg3[%c0_1, %c0_2, %c0_3] : memref<1x8x256xf32, #tpu.memory_space<vmem>>, vector<1x8x256xf32>
    %6 = vector.shape_cast %5 : vector<1x8x256xf32> to vector<8x256xf32>
    %7 = vector.broadcast %1 : vector<8x1xf32> to vector<8x256xf32>
    %8 = arith.mulf %7, %6 : vector<8x256xf32>
    %c0_4 = arith.constant 0 : index
    %c0_5 = arith.constant 0 : index
    %c0_6 = arith.constant 0 : index
    %9 = vector.load %arg4[%c0_4, %c0_5, %c0_6] : memref<1x8x256xf32, #tpu.memory_space<vmem>>, vector<1x8x256xf32>
    %10 = vector.shape_cast %9 : vector<1x8x256xf32> to vector<8x256xf32>
    %11 = vector.broadcast %2 : vector<8x1xf32> to vector<8x256xf32>
    %12 = arith.mulf %11, %10 : vector<8x256xf32>
    %13 = arith.addf %8, %12 : vector<8x256xf32>
    %14 = vector.broadcast %3 : vector<8x1xf32> to vector<8x256xf32>
    %15 = arith.addf %13, %14 : vector<8x256xf32>
    %cst = arith.constant 0.000000e+00 : f32
    %16 = vector.broadcast %cst : f32 to vector<8x256xf32>
    %17 = arith.maximumf %15, %16 : vector<8x256xf32>
    %18 = vector.broadcast %4 : vector<8x1xf32> to vector<8x256xf32>
    %19 = arith.mulf %18, %17 : vector<8x256xf32>
    %cst_7 = arith.constant dense<0.000000e+00> : vector<256xf32>
    %20 = vector.multi_reduction <add>, %19, %cst_7 [0] : vector<8x256xf32> to vector<256xf32>
    %21 = vector.shape_cast %20 : vector<256xf32> to vector<1x256xf32>
    %c0_8 = arith.constant 0 : index
    %c0_9 = arith.constant 0 : index
    %c0_10 = arith.constant 0 : index
    %22 = vector.load %arg6[%c0_8, %c0_9, %c0_10] : memref<1x1x256xf32, #tpu.memory_space<vmem>>, vector<1x1x256xf32>
    %23 = vector.shape_cast %22 : vector<1x1x256xf32> to vector<1x256xf32>
    %24 = vector.shape_cast %21 : vector<1x256xf32> to vector<1x1x256xf32>
    tpu.vector_store %arg6[%c0_8, %c0_9, %c0_10], %24 {strides = array<i32>} : memref<1x1x256xf32, #tpu.memory_space<vmem>>, vector<1x1x256xf32>,
    %c0_i32 = arith.constant 0 : i32
    %25 = arith.cmpi eq, %arg2, %c0_i32 : i32
    %26 = arith.extui %25 : i1 to i32
    %c0_i32_11 = arith.constant 0 : i32
    %27 = arith.cmpi ne, %26, %c0_i32_11 : i32
    scf.if %27 {
      %cst_24 = arith.constant 0.000000e+00 : f32
      %42 = vector.broadcast %cst_24 : f32 to vector<1x1xf32>
      %c0_25 = arith.constant 0 : index
      %c0_26 = arith.constant 0 : index
      %43 = vector.load %arg8[%c0_25, %c0_26] : memref<1x1xf32, #tpu.memory_space<vmem>>, vector<1x1xf32>
      tpu.vector_store %arg8[%c0_25, %c0_26], %42 {strides = array<i32>} : memref<1x1xf32, #tpu.memory_space<vmem>>, vector<1x1xf32>,
      %cst_27 = arith.constant 0.000000e+00 : f32
      %44 = vector.broadcast %cst_27 : f32 to vector<1x1xf32>
      %c0_28 = arith.constant 0 : index
      %c0_29 = arith.constant 0 : index
      %45 = vector.load %arg9[%c0_28, %c0_29] : memref<1x1xf32, #tpu.memory_space<vmem>>, vector<1x1xf32>
      tpu.vector_store %arg9[%c0_28, %c0_29], %44 {strides = array<i32>} : memref<1x1xf32, #tpu.memory_space<vmem>>, vector<1x1xf32>,
    } else {
    }
    %c0_12 = arith.constant 0 : index
    %c0_13 = arith.constant 0 : index
    %28 = vector.load %arg8[%c0_12, %c0_13] : memref<1x1xf32, #tpu.memory_space<vmem>>, vector<1x1xf32>
    %cst_14 = arith.constant dense<0.000000e+00> : vector<1xf32>
    %29 = vector.multi_reduction <add>, %21, %cst_14 [1] : vector<1x256xf32> to vector<1xf32>
    %30 = vector.shape_cast %29 : vector<1xf32> to vector<1x1xf32>
    %31 = arith.addf %28, %30 : vector<1x1xf32>
    %c0_15 = arith.constant 0 : index
    %c0_16 = arith.constant 0 : index
    %32 = vector.load %arg8[%c0_15, %c0_16] : memref<1x1xf32, #tpu.memory_space<vmem>>, vector<1x1xf32>
    tpu.vector_store %arg8[%c0_15, %c0_16], %31 {strides = array<i32>} : memref<1x1xf32, #tpu.memory_space<vmem>>, vector<1x1xf32>,
    %c0_17 = arith.constant 0 : index
    %c0_18 = arith.constant 0 : index
    %33 = vector.load %arg9[%c0_17, %c0_18] : memref<1x1xf32, #tpu.memory_space<vmem>>, vector<1x1xf32>
    %34 = arith.mulf %21, %21 : vector<1x256xf32>
    %cst_19 = arith.constant dense<0.000000e+00> : vector<1xf32>
    %35 = vector.multi_reduction <add>, %34, %cst_19 [1] : vector<1x256xf32> to vector<1xf32>
    %36 = vector.shape_cast %35 : vector<1xf32> to vector<1x1xf32>
    %37 = arith.addf %33, %36 : vector<1x1xf32>
    %c0_20 = arith.constant 0 : index
    %c0_21 = arith.constant 0 : index
    %38 = vector.load %arg9[%c0_20, %c0_21] : memref<1x1xf32, #tpu.memory_space<vmem>>, vector<1x1xf32>
    tpu.vector_store %arg9[%c0_20, %c0_21], %37 {strides = array<i32>} : memref<1x1xf32, #tpu.memory_space<vmem>>, vector<1x1xf32>,
    %c0_i32_22 = arith.constant 0 : i32
    %39 = arith.cmpi eq, %arg2, %c0_i32_22 : i32
    %40 = arith.extui %39 : i1 to i32
    %c0_i32_23 = arith.constant 0 : i32
    %41 = arith.cmpi ne, %40, %c0_i32_23 : i32
    scf.if %41 {
      %c0_24 = arith.constant 0 : index
      %c0_25 = arith.constant 0 : index
      %42 = vector.load %arg8[%c0_24, %c0_25] : memref<1x1xf32, #tpu.memory_space<vmem>>, vector<1x1xf32>
      %c0_26 = arith.constant 0 : index
      %c0_27 = arith.constant 0 : index
      %43 = vector.load %arg9[%c0_26, %c0_27] : memref<1x1xf32, #tpu.memory_space<vmem>>, vector<1x1xf32>
      %44 = tpu.concatenate %42, %43 in 1 : vector<1x1xf32>, vector<1x1xf32> -> vector<1x2xf32>
      %c0_28 = arith.constant 0 : index
      %c0_29 = arith.constant 0 : index
      %c0_30 = arith.constant 0 : index
      %45 = vector.load %arg7[%c0_28, %c0_29, %c0_30] : memref<1x1x2xf32, #tpu.memory_space<vmem>>, vector<1x1x2xf32>
      %46 = vector.shape_cast %45 : vector<1x1x2xf32> to vector<1x2xf32>
      %47 = vector.shape_cast %44 : vector<1x2xf32> to vector<1x1x2xf32>
      tpu.vector_store %arg7[%c0_28, %c0_29, %c0_30], %47 {strides = array<i32>} : memref<1x1x2xf32, #tpu.memory_space<vmem>>, vector<1x1x2xf32>,
    } else {
    }
    return
  }
  func.func @transform_0(%arg0: i32, %arg1: i32, %arg2: i32) -> (i32, i32, i32) {
    %c1_i32 = arith.constant 1 : i32
    %0 = arith.muli %arg1, %c1_i32 : i32
    %1 = arith.addi %0, %arg2 : i32
    %c0_i32 = arith.constant 0 : i32
    %c0_i32_0 = arith.constant 0 : i32
    return %arg0, %c0_i32, %1 : i32, i32, i32
  }
  func.func @transform_1(%arg0: i32, %arg1: i32, %arg2: i32) -> (i32, i32, i32) {
    %c1_i32 = arith.constant 1 : i32
    %0 = arith.muli %arg1, %c1_i32 : i32
    %1 = arith.addi %0, %arg2 : i32
    %c0_i32 = arith.constant 0 : i32
    %c0_i32_0 = arith.constant 0 : i32
    return %arg0, %c0_i32, %1 : i32, i32, i32
  }
  func.func @transform_2(%arg0: i32, %arg1: i32, %arg2: i32) -> (i32, i32) {
    %c0_i32 = arith.constant 0 : i32
    %c0_i32_0 = arith.constant 0 : i32
    %c0_i32_1 = arith.constant 0 : i32
    return %c0_i32, %c0_i32_0 : i32, i32
  }
  func.func @transform_3(%arg0: i32, %arg1: i32, %arg2: i32) -> (i32, i32, i32) {
    %c1_i32 = arith.constant 1 : i32
    %0 = arith.muli %arg1, %c1_i32 : i32
    %1 = arith.addi %0, %arg2 : i32
    %c0_i32 = arith.constant 0 : i32
    %c0_i32_0 = arith.constant 0 : i32
    return %arg0, %c0_i32, %1 : i32, i32, i32
  }
  func.func @transform_4(%arg0: i32, %arg1: i32, %arg2: i32) -> (i32, i32, i32) {
    %c1_i32 = arith.constant 1 : i32
    %0 = arith.muli %arg0, %c1_i32 : i32
    %1 = arith.addi %0, %arg1 : i32
    %c0_i32 = arith.constant 0 : i32
    %c0_i32_0 = arith.constant 0 : i32
    %c0_i32_1 = arith.constant 0 : i32
    return %1, %c0_i32, %c0_i32_0 : i32, i32, i32
  }
}

</mosaic_0001>

<bundles_post_ra>
// kernel: attention_block.5
= control target key start
LH: loop header
LB: loop body
LE: loop exit
PB: predicated region body
PF: predicated region fallthrough
CT: control target
= control target key end

     0   :  { %8 = vsyncpa [#allocation3], 0  ;;  %s528_s12 = smov 0   ;;  %s530_s13 = smov 0   ;;  %s572_s0 = inlined_call_operand.vmem [shape: f32[2,4,256], index: 0, kind: input, shape index: {}]   ;;  %s573_s1 = inlined_call_operand.vmem [shape: f32[2,1,256], index: 1, kind: input, shape index: {}]   ;;  %s574_s2 = inlined_call_operand.vmem [shape: f32[2], index: 2, kind: input, shape index: {}]   ;;  %s575_s3 = inlined_call_operand.vmem [shape: f32[2,4,256], index: 3, kind: output, shape index: {}]  }
   0x1   :  { %s532_s14 = smov 0  }
   0x2 LB: > { %s407_s15 = sadd.s32 4294967295, %s505_s14   ;;  %s26_s16 = sadd.s32 1, %s501_s13  ;;  %s505_s14 = sphi %s532_s14, %s14_s14   ;;  %s501_s13 = sphi %s530_s13, %s577_s13   ;;  %s497_s12 = sphi %s528_s12, %s576_s12  }
   0x3   : > { %p28_p0 = scmp.ge.s32.totalorder %s26_s16, 2  ;;  %p409_p1 = scmp.ge.s32.totalorder %s505_s14, 1 }
   0x4   : > { %p136_p2 = scmp.lt.s32.totalorder %s505_s14, 3  ;;  %p433_p4 = scmp.eq.s32.totalorder %s407_s15, 0 }
   0x5   : > { %s579_s16 = smov (%p28_p0, %s26_s16), 0  ;;  %s148_s19 = sshll.u32 %s574_s2, 4  ;;  %s149_s19 = int_to_ptr.vmem [resolvable:$true] %s148_s19 }
   0x6   : > { %p137_p3 = pnand %p409_p1, %p136_p2  ;;  %s507_s20 = smov [#allocation2]  }
   0x8   : > { %p429_p5 = pneg %p137_p3  ;;  %186 = sbr.rel (%p137_p3) target bundleno = 63 (0x3f), region = 32 }
   0xa   : > { %p430_p6 = pnand %p433_p4, %p429_p5 }
   0xc   : > { %432 = dma.vmem_to_smem (!%p430_p6), %s149_s19, 16, %s507_s20, [#allocation3]  }
   0xd   : > { %492 = dma.done.wait (%p433_p4), [#allocation3], 16  }
   0xe   : > { %494 = vsyncadd (%p433_p4), [#allocation3], 4294967280 }
   0xf   : > { %193 = sfence }
  0x10   : > { %p229_p7 = scmp.lt.s32.totalorder %s497_s12, 1  ;;  %s257_s21 = sld [smem:[#allocation2]]  ;;  %vm288_vm4 = vcmask 1043456  }
  0x11   : > { %s419_s22 = sld [smem:[#allocation2 + $0x1]] }
  0x12   : > { %s581_s12 = smov (!%p229_p7, %s497_s12), 1 }
  0x13   : > { %s416_s23 = sshll.u32 %s581_s12, 1  ;;  %s423_s27 = sshll.u32 %s581_s12, 3 }
  0x14   : > { %s245_s26 = scalar_lea.vmem %s573_s1, %s416_s23  ;;  %s236_s30 = scalar_lea.vmem %s572_s0, %s423_s27 }
  0x15   : > { %v259_v0 = vld [vmem:[%s245_s26] sm:$0x3]  ;;  %s255_s6 = scalar_lea.vmem %s575_s3, %s423_s27 }
  0x16   : > { %v260_v1 = vstv %s257_s21  ;;  %v283_v20 = vld [vmem:[%s236_s30] sm:$0xff] }
  0x17   : > { %v261_v2 = vmul.f32 %v260_v1, %v259_v0  ;;  %v262_v3 = vstv %s419_s22 }
  0x19   : > { %v263_v4 = vadd.f32 %v262_v3, %v261_v2 }
  0x1b   : > { %v420_v5 = vmul.f32 -1.442695, %v263_v4 }
  0x1d   : > { %460 = vpow2.f32 %v420_v5 }
  0x23   : > { %v461_v6 = vpop.eup %460 }
  0x24   : > { %v267_v7 = vadd.f32 1.0, %v461_v6 }
  0x26   : > { %462 = vrcp.f32 %v267_v7  ;;  %v279_v10 = vand.u32 2147483648, %v267_v7  ;;  %vm273_vm0 = vweird.f32 %v267_v7  ;;  %v277_v12 = vand.u32 2147483647, %v267_v7 }
  0x28   : > { %v280_v14 = vor.u32 1.1754944e-38, %v279_v10  ;;  %vm278_vm3 = vcmp.eq.f32.partialorder %v277_v12, 8.507059e+37 }
  0x2c   : > { %v463_v8 = vpop.eup %462 }
  0x2d   : > { %v269_v9 = vmul.f32 %v463_v8, %v267_v7  ;;  %vm274_vm1 = vweird.f32 %v463_v8 }
  0x2e   : > { %vm275_vm2 = vmor %vm273_vm0, %vm274_vm1 }
  0x2f   : > { %v270_v11 = vsub.f32 1.0, %v269_v9 }
  0x31   : > { %v271_v13 = vmul.f32 %v463_v8, %v270_v11 }
  0x33   : > { %v272_v15 = vadd.f32 %v463_v8, %v271_v13 }
  0x35   : > { %v276_v16 = vsel %vm275_vm2, %v463_v8, %v272_v15 }
  0x36   : > { %v281_v17 = vsel %vm278_vm3, %v280_v14, %v276_v16 }
  0x37   : > { %v285_v18 = vperm.slane %v281_v17, 0  ;;  %v286_v19 = vperm.slane %v281_v17, 1 }
  0x39   : > { %v287_v21 = vrot.slane %v286_v19, 4 }
  0x3b   : > { %v289_v22 = vsel %vm288_vm4, %v285_v18, %v287_v21 }
  0x3c   : > { %v291_v23 = vmul.f32 %v289_v22, %v283_v20 }
  0x3e   : > { %292 = vst [vmem:[%s255_s6] sm:$0xff] %v291_v23 }
  0x3f PF: > { %s14_s14 = sadd.s32 1, %s505_s14   ;;  %s576_s12 = smov %s501_s13 }
  0x40   : > { %p11_p8 = scmp.ge.s32.totalorder %s14_s14, 4   ;;  %s577_s13 = smov %s579_s16 }
  0x42   :  { %13 = sbr.rel (!%p11_p8) target bundleno = 2 (0x2), region = 70 }
  0x47   :  { %323 = vsyncpa [#allocation3], 1 }
  0x48   :  { %325 = vsyncpa [#allocation3 + $0x1], 1 }

// kernel: attention_block.4
= control target key start
LH: loop header
LB: loop body
LE: loop exit
PB: predicated region body
PF: predicated region fallthrough
CT: control target
= control target key end

     0   :  { %s642_s15 = smov 0   ;;  %s644_s16 = smov 0   ;;  %s693_s0 = inlined_call_operand.vmem [shape: f32[2,8,256], index: 0, kind: input, shape index: {}]   ;;  %s694_s1 = inlined_call_operand.vmem [shape: f32[2,8,256], index: 1, kind: input, shape index: {}]   ;;  %s695_s2 = inlined_call_operand.vmem [shape: f32[8,4], index: 2, kind: input, shape index: {}]   ;;  %s696_s3 = inlined_call_operand.vmem [shape: f32[2,1,256], index: 3, kind: output, shape index: {0}]   ;;  %s697_s4 = inlined_call_operand.vmem [shape: f32[2,1,2], index: 4, kind: output, shape index: {1}]  }
   0x1   :  { %s646_s17 = smov 0  }
   0x2 LB: > { %s34_s18 = sadd.s32 1, %s605_s16  ;;  %p541_p0 = scmp.ge.s32.totalorder %s609_s17, 1  ;;  %s609_s17 = sphi %s646_s17, %s15_s17   ;;  %s605_s16 = sphi %s644_s16, %s699_s16   ;;  %s601_s15 = sphi %s642_s15, %s698_s15  }
   0x3   : > { %p36_p1 = scmp.ge.s32.totalorder %s34_s18, 2  ;;  %p222_p2 = scmp.lt.s32.totalorder %s609_s17, 3 }
   0x5   : > { %s701_s18 = smov (%p36_p1, %s34_s18), 0  ;;  %p223_p3 = pnand %p541_p0, %p222_p2 }
   0x6   : > { %p273_p4 = scmp.lt.s32.totalorder (!%p223_p3), %s601_s15, 1  ;;  %s616_s6 = smov (!%p223_p3), 1  }
   0x7   : > { %226 = sbr.rel (%p223_p3) target bundleno = 407 (0x197), region = 32 }
   0xc   : > { %v311_v0 = vld [vmem:[%s695_s2] sm:$0xff]  ;;  %v611_v1 = vmov 0   ;;  %v612_v2 = vmov 2   ;;  %v613_v3 = vmov 1   ;;  %v614_v4 = vmov 3   ;;  %s703_s15 = smov (!%p273_p4, %s601_s15), 1 }
   0xd   : > { %581 = vset.pattern.permute.xlu0 %v611_v1  ;;  %583 = vset.pattern.permute.xlu1 %v612_v2  ;;  %s549_s21 = sshll.u32 %s703_s15, 4  ;;  %vm372_vm0 = vcmask 0   ;;  %v615_v18 = vmov 0.0   ;;  %v363_v36 = vlaneseq  ;;  %s546_s28 = sshll.u32 %s703_s15, 1  ;;  %vm360_vm1 = vcmask 1040384  }
   0xe   : > { %316 = vperm.xlu0 %581, %v311_v0   ;;  %332 = vperm.xlu1 %583, %v311_v0   ;;  %s280_s24 = scalar_lea.vmem %s693_s0, %s549_s21  ;;  %s292_s27 = scalar_lea.vmem %s694_s1, %s549_s21  ;;  %374 = vst.msk [vmem:[#allocation3] sm:$0x1] %vm372_vm0, %v615_v18  ;;  %vm400_vm3 = vcmask 7168   ;;  %vm402_vm4 = vcmask 8192  }
   0xf   : > { %v312_v7 = vld [vmem:[%s280_s24] sm:$0xff]  ;;  %v313_v8 = vld [vmem:[%s280_s24 + $0x8] sm:$0xff]  ;;  %373 = vst.msk [vmem:[#allocation2] sm:$0x1] %vm372_vm0, %v615_v18  ;;  %s303_s5 = scalar_lea.vmem %s696_s3, %s546_s28  ;;  %vm365_vm2 = vcmp.lt.s32.totalorder %v363_v36, 256  ;;  %s309_s9 = scalar_lea.vmem %s697_s4, %s703_s15 }
  0x10   : > { %v321_v9 = vld [vmem:[%s292_s27] sm:$0xff]  ;;  %v322_v10 = vld [vmem:[%s292_s27 + $0x8] sm:$0xff] }
  0x15   : > { %v382_v45 = vld [vmem:[#allocation3] sm:$0x1] }
  0x16   : > { %582 = vset.pattern.permute.xlu0 %v613_v3  ;;  %584 = vset.pattern.permute.xlu1 %v614_v4  ;;  %v375_v48 = vld [vmem:[#allocation2] sm:$0x1] }
  0x17   : > { %324 = vperm.xlu0 %582, %v311_v0   ;;  %340 = vperm.xlu1 %584, %v311_v0  }
  0x1f   : > { %585 = vset.pattern.permute.xlu0 %v614_v4 }
  0x80   : > { %v317_v5 = vpop.permute.xlu0 %316  ;;  %v333_v6 = vpop.permute.xlu1 %332 }
  0x81   : > { %v319_v12 = vmul.f32 %v317_v5, %v312_v7  ;;  %v320_v13 = vmul.f32 %v317_v5, %v313_v8 }
  0x89   : > { %v325_v11 = vpop.permute.xlu0 %324  ;;  %v341_v21 = vpop.permute.xlu1 %340 }
  0x8a   : > { %v327_v14 = vmul.f32 %v325_v11, %v321_v9  ;;  %v328_v15 = vmul.f32 %v325_v11, %v322_v10 }
  0x8c   : > { %v329_v16 = vadd.f32 %v327_v14, %v319_v12  ;;  %v330_v17 = vadd.f32 %v328_v15, %v320_v13 }
  0x8e   : > { %v335_v19 = vadd.f32 %v333_v6, %v329_v16  ;;  %v336_v20 = vadd.f32 %v333_v6, %v330_v17 }
  0x90   : > { %v337_v22 = vmax.f32 %v335_v19, 0.0  ;;  %v338_v23 = vmax.f32 %v336_v20, 0.0 }
  0x92   : > { %v343_v24 = vmul.f32 %v341_v21, %v337_v22  ;;  %v344_v25 = vmul.f32 %v341_v21, %v338_v23 }
  0x94   : > { %v345_v26 = vrot.slane %v343_v24, 4  ;;  %v351_v27 = vrot.slane %v344_v25, 4 }
  0x96   : > { %v346_v28 = vadd.f32 %v345_v26, %v343_v24  ;;  %v352_v29 = vadd.f32 %v351_v27, %v344_v25 }
  0x98   : > { %v347_v30 = vrot.slane %v346_v28, 2  ;;  %v353_v31 = vrot.slane %v352_v29, 2 }
  0x9a   : > { %v348_v32 = vadd.f32 %v347_v30, %v346_v28  ;;  %v354_v33 = vadd.f32 %v353_v31, %v352_v29 }
  0x9c   : > { %v349_v34 = vrot.slane %v348_v32, 1  ;;  %v355_v35 = vrot.slane %v354_v33, 1 }
  0x9e   : > { %v350_v37 = vadd.f32 %v349_v34, %v348_v32  ;;  %v356_v38 = vadd.f32 %v355_v35, %v354_v33 }
  0xa0   : > { %v359_v39 = vrot.slane %v356_v38, 7  ;;  %v383_v40 = vmul.f32 %v350_v37, %v350_v37  ;;  %v384_v41 = vmul.f32 %v356_v38, %v356_v38  ;;  %v376_v44 = vadd.f32 %v356_v38, %v350_v37 }
  0xa2   : > { %v385_v42 = vadd.f32 %v384_v41, %v383_v40  ;;  %v361_v43 = vsel %vm360_vm1, %v350_v37, %v359_v39 }
  0xa3   : > { %367 = vst.msk [vmem:[%s303_s5] sm:$0x3] %vm365_vm2, %v361_v43 }
  0xa4   : > { %386 = vadd.xlane.f32.xlu2 %v385_v42 }
  0xac   : > { %377 = vadd.xlane.f32.xlu2 %v376_v44 }
 0x117   : > { %v387_v46 = vpop.xlane.xlu2 %386 }
 0x118   : > { %v388_v47 = vadd.f32 %v387_v46, %v382_v45 }
 0x11a   : > { %389 = vst.msk [vmem:[#allocation3] sm:$0x1] %vm372_vm0, %v388_v47 }
 0x11f   : > { %v378_v49 = vpop.xlane.xlu2 %377 }
 0x120   : > { %v379_v50 = vadd.f32 %v378_v49, %v375_v48 }
 0x121   : > { %v586_v51 = vld [vmem:[#allocation3] ss:$0 sm:$0xff] }
 0x122   : > { %381 = vst.msk [vmem:[#allocation2] sm:$0x1] %vm372_vm0, %v379_v50  ;;  %397 = vrot.lane.b32.xlu1 %v586_v51, %s616_s6 }
 0x129   : > { %v393_v53 = vld [vmem:[#allocation2] sm:$0x1] }
 0x194   : > { %v398_v52 = vpop.permute.xlu1 %397 }
 0x195   : > { %v401_v54 = vsel %vm400_vm3, %v393_v53, %v398_v52 }
 0x196   : > { %403 = vst.msk [vmem:[%s309_s9] sm:$0x1] %vm402_vm4, %v401_v54 }
 0x197 PF: > { %s15_s17 = sadd.s32 1, %s609_s17   ;;  %s698_s15 = smov %s605_s16 }
 0x198   : > { %p12_p5 = scmp.ge.s32.totalorder %s15_s17, 4   ;;  %s699_s16 = smov %s701_s18 }
 0x19a   :  { %14 = sbr.rel (!%p12_p5) target bundleno = 2 (0x2), region = 85 }

// kernel: attention_block.3
= control target key start
LH: loop header
LB: loop body
LE: loop exit
PB: predicated region body
PF: predicated region fallthrough
CT: control target
= control target key end

     0   :  { %s889_s21 = smov 0   ;;  %s891_s22 = smov 0   ;;  %s960_s0 = inlined_call_operand.vmem [shape: f32[2,4,256], index: 0, kind: input, shape index: {}]   ;;  %s961_s1 = inlined_call_operand.vmem [shape: f32[2,4,256], index: 1, kind: input, shape index: {}]   ;;  %s962_s2 = inlined_call_operand.vmem [shape: f32[8,4], index: 2, kind: input, shape index: {}]   ;;  %s963_s3 = inlined_call_operand.vmem [shape: f32[8,4], index: 3, kind: input, shape index: {}]   ;;  %s964_s4 = inlined_call_operand.vmem [shape: f32[2,8,256], index: 4, kind: output, shape index: {0}]   ;;  %s965_s5 = inlined_call_operand.vmem [shape: f32[2,8,256], index: 5, kind: output, shape index: {1}]   ;;  %s966_s6 = inlined_call_operand.vmem [shape: f32[2,8,4], index: 6, kind: output, shape index: {2}]  }
   0x1   :  { %s893_s23 = smov 0  }
   0x2 LB: > { %s36_s24 = sadd.s32 1, %s844_s22  ;;  %p774_p0 = scmp.ge.s32.totalorder %s848_s23, 1  ;;  %s848_s23 = sphi %s893_s23, %s17_s23   ;;  %s844_s22 = sphi %s891_s22, %s968_s22   ;;  %s840_s21 = sphi %s889_s21, %s967_s21  }
   0x3   : > { %p38_p1 = scmp.ge.s32.totalorder %s36_s24, 2  ;;  %p278_p2 = scmp.lt.s32.totalorder %s848_s23, 3 }
   0x5   : > { %s970_s24 = smov (%p38_p1, %s36_s24), 0  ;;  %p279_p3 = pnand %p774_p0, %p278_p2 }
   0x6   : > { %p345_p4 = scmp.lt.s32.totalorder (!%p279_p3), %s840_s21, 1  ;;  %s851_s19 = smov (!%p279_p3), 1  }
   0x7   : > { %282 = sbr.rel (%p279_p3) target bundleno = 412 (0x19c), region = 36  ;;  %s852_s20 = smov (!%p279_p3), 2  }
   0xc   : > { %s972_s21 = smov (!%p345_p4, %s840_s21), 1  ;;  %vm407_vm0 = vcmask 1043456   ;;  %v397_v2 = vld [vmem:[%s962_s2] sm:$0xff]  ;;  %vm403_vm1 = vcmask 31744   ;;  %vm513_vm2 = vcmask 7168   ;;  %v850_v8 = vmov 0.0  }
   0xd   : > { %s910_s25 = sshll.u32 %s972_s21, 3  ;;  %v452_v5 = vld [vmem:[%s963_s3] sm:$0xff]  ;;  %515 = vst.msk [vmem:[#allocation3] sm:$0xff] %vm513_vm2, %v850_v8  ;;  %s796_s12 = sshll.u32 %s972_s21, 4  ;;  %vm567_vm3 = vcmask 15360   ;;  %vm569_vm4 = vcmask 23552  }
   0xe   : > { %s352_s28 = scalar_lea.vmem %s960_s0, %s910_s25  ;;  %s364_s7 = scalar_lea.vmem %s961_s1, %s910_s25  ;;  %514 = vst.msk [vmem:[#allocation2] sm:$0xff] %vm513_vm2, %v850_v8 }
   0xf   : > { %v398_v0 = vld [vmem:[%s352_s28] sm:$0xff]  ;;  %s376_s15 = scalar_lea.vmem %s964_s4, %s796_s12  ;;  %516 = vst.msk [vmem:[#allocation4] sm:$0xff] %vm513_vm2, %v850_v8  ;;  %s388_s18 = scalar_lea.vmem %s965_s5, %s796_s12 }
  0x10   : > { %400 = vst [vmem:[#allocation1] ss:$2 sm:$0xff] %v398_v0  ;;  %v453_v1 = vld [vmem:[%s364_s7] sm:$0xff]  ;;  %s853_s21 = smov 3   ;;  %s395_s28 = scalar_lea.vmem %s966_s6, %s910_s25 }
  0x11   : > { %517 = vst.msk [vmem:[#allocation5] sm:$0xff] %vm513_vm2, %v850_v8 }
  0x14   : > { %v525_v21 = vld [vmem:[#allocation3] sm:$0xff] }
  0x15   : > { %v518_v31 = vld [vmem:[#allocation2] sm:$0xff] }
  0x16   : > { %v533_v25 = vld [vmem:[#allocation4] sm:$0xff] }
  0x17   : > { %v401_v3 = vld.sshfl [vmem:[#allocation1] sm:$0xff pattern:$0x75316420]  ;;  %v402_v4 = vld.sshfl [vmem:[#allocation1 + $0x8] sm:$0xff pattern:$0x75316420] }
  0x18   : > { %784 = vmatpush.msk.msra.mxu0 %vm407_vm0, %v401_v3  ;;  %786 = vmatpush.msk.msra.mxu1 %vm407_vm0, %v402_v4  ;;  %455 = vst [vmem:[#allocation1] ss:$2 sm:$0xff] %v453_v1  ;;  %v539_v27 = vld [vmem:[#allocation5] sm:$0xff] }
  0x19   : > { %785 = vmatmul.msk.f32.vlgmr.msra.gmra.mxu0 %vm403_vm1, %v397_v2  ;;  %787 = vmatmul.msk.f32.vlgmr.msra.gmra.mxu1 %vm403_vm1, %v397_v2 }
  0x1f   : > { %v456_v6 = vld.sshfl [vmem:[#allocation1] sm:$0xff pattern:$0x75316420]  ;;  %v457_v7 = vld.sshfl [vmem:[#allocation1 + $0x8] sm:$0xff pattern:$0x75316420] }
  0x20   : > { %788 = vmatpush.msk.msra.mxu2 %vm407_vm0, %v456_v6  ;;  %790 = vmatpush.msk.msra.mxu3 %vm407_vm0, %v457_v7 }
  0x21   : > { %789 = vmatmul.msk.f32.vlgmr.msra.gmra.mxu2 %vm403_vm1, %v452_v5  ;;  %791 = vmatmul.msk.f32.vlgmr.msra.gmra.mxu3 %vm403_vm1, %v452_v5 }
  0x96   : > { %v429_v9 = vpop.f32.mrf.mxu0  ;;  %v449_v10 = vpop.f32.mrf.mxu1 }
  0x97   : > { %505 = vst [vmem:[%s376_s15] sm:$0xff] %v429_v9  ;;  %v526_v11 = vmul.f32 %v429_v9, %v429_v9  ;;  %v527_v12 = vmul.f32 %v449_v10, %v449_v10  ;;  %v519_v20 = vadd.f32 %v449_v10, %v429_v9 }
  0x98   : > { %506 = vst [vmem:[%s376_s15 + $0x8] sm:$0xff] %v449_v10 }
  0x99   : > { %v528_v13 = vadd.f32 %v527_v12, %v526_v11 }
  0x9b   : > { %529 = vadd.xlane.f32.xlu0 %v528_v13 }
  0xa4   : > { %v482_v14 = vpop.f32.mrf.mxu2  ;;  %v502_v15 = vpop.f32.mrf.mxu3 }
  0xa5   : > { %507 = vst [vmem:[%s388_s18] sm:$0xff] %v482_v14  ;;  %v540_v16 = vmul.f32 %v482_v14, %v482_v14  ;;  %v541_v17 = vmul.f32 %v502_v15, %v502_v15  ;;  %v534_v18 = vadd.f32 %v502_v15, %v482_v14 }
  0xa6   : > { %508 = vst [vmem:[%s388_s18 + $0x8] sm:$0xff] %v502_v15 }
  0xa7   : > { %535 = vadd.xlane.f32.xlu0 %v534_v18  ;;  %v542_v19 = vadd.f32 %v541_v17, %v540_v16 }
  0xa9   : > { %543 = vadd.xlane.f32.xlu1 %v542_v19 }
  0xb1   : > { %520 = vadd.xlane.f32.xlu1 %v519_v20 }
 0x10e   : > { %v530_v22 = vpop.xlane.xlu0 %529 }
 0x10f   : > { %v531_v23 = vadd.f32 %v530_v22, %v525_v21 }
 0x111   : > { %532 = vst.msk [vmem:[#allocation3] sm:$0xff] %vm513_vm2, %v531_v23 }
 0x118   : > { %v551_v24 = vld [vmem:[#allocation3] sm:$0xff] }
 0x119   : > { %555 = vrot.lane.b32.xlu2 %v551_v24, %s851_s19 }
 0x11a   : > { %v536_v26 = vpop.xlane.xlu0 %535 }
 0x11b   : > { %v537_v28 = vadd.f32 %v536_v26, %v533_v25 }
 0x11c   : > { %v544_v29 = vpop.xlane.xlu1 %543 }
 0x11d   : > { %538 = vst.msk [vmem:[#allocation4] sm:$0xff] %vm513_vm2, %v537_v28  ;;  %v545_v30 = vadd.f32 %v544_v29, %v539_v27 }
 0x11f   : > { %546 = vst.msk [vmem:[#allocation5] sm:$0xff] %vm513_vm2, %v545_v30 }
 0x124   : > { %v552_v32 = vld [vmem:[#allocation4] sm:$0xff]  ;;  %v521_v33 = vpop.xlane.xlu1 %520 }
 0x125   : > { %559 = vrot.lane.b32.xlu2 %v552_v32, %s852_s20  ;;  %v522_v34 = vadd.f32 %v521_v33, %v518_v31 }
 0x126   : > { %v553_v35 = vld [vmem:[#allocation5] sm:$0xff] }
 0x127   : > { %563 = vrot.lane.b32.xlu0 %v553_v35, %s853_s21  ;;  %524 = vst.msk [vmem:[#allocation2] sm:$0xff] %vm513_vm2, %v522_v34 }
 0x12e   : > { %v550_v38 = vld [vmem:[#allocation2] sm:$0xff] }
 0x173   : > { %v556_v36 = vpop.permute.xlu2 %555 }
 0x174   : > { %v566_v39 = vsel %vm513_vm2, %v550_v38, %v556_v36 }
 0x17f   : > { %v560_v37 = vpop.permute.xlu2 %559 }
 0x180   : > { %v568_v40 = vsel %vm567_vm3, %v566_v39, %v560_v37 }
 0x199   : > { %v564_v41 = vpop.permute.xlu0 %563 }
 0x19a   : > { %v570_v42 = vsel %vm569_vm4, %v568_v40, %v564_v41 }
 0x19b   : > { %571 = vst.msk [vmem:[%s395_s28] sm:$0xff] %vm403_vm1, %v570_v42 }
 0x19c PF: > { %s17_s23 = sadd.s32 1, %s848_s23   ;;  %s967_s21 = smov %s844_s22 }
 0x19d   : > { %p14_p5 = scmp.ge.s32.totalorder %s17_s23, 4   ;;  %s968_s22 = smov %s970_s24 }
 0x19f   :  { %16 = sbr.rel (!%p14_p5) target bundleno = 2 (0x2), region = 101 }

</bundles_post_ra>
